<compile_context>
chip_gen: v7x
topology: tpu7x:2x2x1
jax: 0.10.0
libtpu: 0.0.40
codegen_flags: <defaults>
</compile_context>

<pallas_src>
import functools

import jax
import jax.numpy as jnp
from jax.experimental import pallas as pl
from jax.experimental.pallas import tpu as pltpu

BN = 128     # lane tile (fixed)
CHUNK = 64   # rows per fused-loop slice: 64*128 f32 = 32 KiB per input per iter


def _round_up(x, m):
    return ((x + m - 1) // m) * m


def _tpu_config():
    """(num_cores, per-input tile bytes per grid step), per TPU generation."""
    kind = ""
    try:
        kind = jax.devices()[0].device_kind.lower()
    except Exception:  # CPU / interpret mode: values only affect tiling.
        pass
    if "v7" in kind or "tpu7" in kind:
        # 2 TCs/chip; 32 MiB default scoped VMEM (64 MiB physical).
        # 4 MiB tiles -> 2 inputs x 2 pipeline buffers = 16 MiB in flight.
        return 2, 4 << 20
    if "v5 lite" in kind or "v5e" in kind or "v5lite" in kind:
        # 1 TC; 16 MiB default scoped VMEM -> keep in-flight <= ~8 MiB.
        return 1, 2 << 20
    # v6e and other single-TC chips: 32 MiB default scoped VMEM.
    return 1, 4 << 20


def _accumulate(x_ref, y_ref, o_ref, *, bm, bn, chunk, unroll,
                rows_total=None, row_base=0):
    """Single fused pass over the (bm, bn) tile: accumulate the five raw
    moments into the resident output block.  If rows_total is given, rows with
    global row index >= rows_total are masked to zero (ragged-tail block)."""
    nchunks = bm // chunk

    def body(i, carry):
        sx, sy, sxy, sxx, syy = carry
        r0 = pl.multiple_of(i * chunk, chunk)
        # Load each slice once, cast once (no whole-tile f32 staging copy).
        xs = x_ref[pl.ds(r0, chunk), :].astype(jnp.float32)
        ys = y_ref[pl.ds(r0, chunk), :].astype(jnp.float32)
        if rows_total is not None:
            # Cheap (chunk, 1) row mask; only the final real block takes this path.
            rid = row_base + r0 + jax.lax.broadcasted_iota(jnp.int32, (chunk, 1), 0)
            valid = rid < rows_total
            xs = jnp.where(valid, xs, 0.0)
            ys = jnp.where(valid, ys, 0.0)
        xs = xs.reshape(chunk // 8, 8, bn)
        ys = ys.reshape(chunk // 8, 8, bn)
        return (sx + jnp.sum(xs, axis=0),
                sy + jnp.sum(ys, axis=0),
                sxy + jnp.sum(xs * ys, axis=0),
                sxx + jnp.sum(xs * xs, axis=0),
                syy + jnp.sum(ys * ys, axis=0))

    init = tuple(jnp.zeros((8, bn), jnp.float32) for _ in range(5))
    sx, sy, sxy, sxx, syy = jax.lax.fori_loop(0, nchunks, body, init, unroll=unroll)
    # Output block is resident across the reduction axis: accumulate in place.
    o_ref[0, 0, :, :] += sx
    o_ref[0, 1, :, :] += sy
    o_ref[0, 2, :, :] += sxy
    o_ref[0, 3, :, :] += sxx
    o_ref[0, 4, :, :] += syy


def _pcc_moments_kernel(x_ref, y_ref, o_ref, *, rows, n_blocks, steps_per_core,
                        bm, bn, chunk, unroll, has_partial_tail, has_overflow):
    c = pl.program_id(0)            # core-split index ("parallel")
    j = pl.program_id(1)            # block index within this core ("arbitrary")
    blk = c * steps_per_core + j    # logical (unclamped) global block id

    @pl.when(j == 0)
    def _():
        o_ref[...] = jnp.zeros_like(o_ref)

    acc = functools.partial(_accumulate, x_ref, y_ref, o_ref,
                            bm=bm, bn=bn, chunk=chunk, unroll=unroll)

    if has_partial_tail:
        # Interior blocks are unmasked; the final real block is row-masked;
        # clamped overflow blocks (blk >= n_blocks) are skipped entirely.
        @pl.when(blk < n_blocks - 1)
        def _():
            acc()

        @pl.when(blk == n_blocks - 1)
        def _():
            acc(rows_total=rows, row_base=(n_blocks - 1) * bm)
    elif has_overflow:
        @pl.when(blk < n_blocks)
        def _():
            acc()
    else:
        acc()


def _as_rows(a):
    """Flatten to (rows, 128) in native dtype. Pads (full copy) only if the
    flat size is not a multiple of 128 lanes; padded lanes are zeros."""
    flat = a.reshape(-1)
    n = flat.shape[0]
    rem = n % BN
    if rem:
        flat = jnp.pad(flat, (0, BN - rem))
    return flat.reshape(-1, BN), n


@functools.partial(jax.jit, static_argnames=("tile_bytes", "num_cores"))
def pcc_loss(inp, tgt, *, tile_bytes=None, num_cores=None):
    """Pallas implementation of PCCLoss.forward. Returns a scalar float32."""
    x2d, n = _as_rows(inp)
    y2d, n2 = _as_rows(tgt)
    assert n == n2, "input and target must have the same number of elements"

    cfg_cores, cfg_bytes = _tpu_config()
    if num_cores is None:
        num_cores = cfg_cores
    if tile_bytes is None:
        tile_bytes = cfg_bytes

    rows = x2d.shape[0]
    itemsize = max(jnp.dtype(x2d.dtype).itemsize, jnp.dtype(y2d.dtype).itemsize)
    # Dtype-aware rows per grid step (multiple of CHUNK): ~tile_bytes per input.
    bm_target = max(CHUNK, (tile_bytes // (BN * itemsize)) // CHUNK * CHUNK)
    bm = min(bm_target, _round_up(rows, CHUNK))

    n_blocks = pl.cdiv(rows, bm)
    spc = pl.cdiv(n_blocks, num_cores)          # grid steps per core
    has_partial_tail = (rows % bm) != 0
    has_overflow = (num_cores * spc) != n_blocks

    # Safety: the grid must cover every row, and any coverage beyond `rows`
    # must be masked/skipped in-kernel (garbage past the array is never summed).
    assert num_cores * spc * bm >= rows
    assert has_partial_tail or (n_blocks * bm == rows)

    nchunks = bm // CHUNK
    unroll = min(nchunks, 4)

    def in_map(c, j):
        # Clamp overflow block ids to a valid block; the kernel skips their compute.
        return (jnp.minimum(c * spc + j, n_blocks - 1), 0)

    kernel = functools.partial(
        _pcc_moments_kernel,
        rows=rows, n_blocks=n_blocks, steps_per_core=spc,
        bm=bm, bn=BN, chunk=CHUNK, unroll=unroll,
        has_partial_tail=has_partial_tail, has_overflow=has_overflow)

    out_bytes = num_cores * 5 * 8 * BN * 4
    cost = pl.CostEstimate(
        flops=10 * n,
        transcendentals=0,
        bytes_accessed=(x2d.size * jnp.dtype(x2d.dtype).itemsize
                        + y2d.size * jnp.dtype(y2d.dtype).itemsize
                        + out_bytes))

    moments = pl.pallas_call(
        kernel,
        out_shape=jax.ShapeDtypeStruct((num_cores, 5, 8, BN), jnp.float32),
        grid_spec=pltpu.PrefetchScalarGridSpec(
            num_scalar_prefetch=0,
            grid=(num_cores, spc),
            in_specs=[
                pl.BlockSpec((bm, BN), in_map),
                pl.BlockSpec((bm, BN), in_map),
            ],
            out_specs=pl.BlockSpec((1, 5, 8, BN), lambda c, j: (c, 0, 0, 0)),
        ),
        compiler_params=pltpu.CompilerParams(
            # "parallel" shards the core axis across the two TCs on v7x and is a
            # harmless size-1 axis on single-TC chips.
            # TODO(synk): if an xprof trace on v7x shows only one core engaged,
            # switch axis 0 to pltpu.CORE_PARALLEL.
            dimension_semantics=("parallel", "arbitrary")),
        cost_estimate=cost,
    )(x2d, y2d)

    # Tiny final combine (cross-core + cross-lane reduction + PCC formula).
    s = jnp.sum(moments, axis=(0, 2, 3))  # [sum_x, sum_y, sum_xy, sum_xx, sum_yy]
    nf = jnp.float32(n)                   # TODO(synk): inexact for n > 2**24
    mx = s[0] / nf
    my = s[1] / nf
    num = s[2] - nf * mx * my
    var_x = s[3] - nf * mx * mx
    var_y = s[4] - nf * my * my
    den = jnp.sqrt(var_x * var_y)
    return jnp.float32(1.0) - num / (den + jnp.float32(1e-8))


def pcc_loss_ref(inp, tgt):
    """Pure-JAX reference matching the PyTorch module exactly."""
    x = inp.astype(jnp.float32)
    y = tgt.astype(jnp.float32)
    xc = x - jnp.mean(x)
    yc = y - jnp.mean(y)
    num = jnp.sum(xc * yc)
    den = jnp.sqrt(jnp.sum(xc ** 2) * jnp.sum(yc ** 2))
    return 1.0 - num / (den + 1e-8)


if __name__ == "__main__":
    key = jax.random.PRNGKey(0)
    k1, k2, k3, k4, k5, k6 = jax.random.split(key, 6)

    # Small NCHW-shaped inputs, consistent with a typical image-loss usage.
    x = jax.random.normal(k1, (2, 4, 16, 16), dtype=jnp.float32)
    t = 0.7 * x + 0.3 * jax.random.normal(k2, (2, 4, 16, 16), dtype=jnp.float32)
    loss = pcc_loss(x, t)
    jax.block_until_ready(loss)
    ref = pcc_loss_ref(x, t)
    assert jnp.allclose(loss, ref, atol=1e-5, rtol=1e-5), (loss, ref)

    # Ragged / non-lane-aligned shape to exercise the masked-tail path.
    x2 = jax.random.normal(k3, (3, 5, 7, 11), dtype=jnp.float32)
    t2 = 0.5 * x2 + 0.5 * jax.random.normal(k4, (3, 5, 7, 11), dtype=jnp.float32)
    loss2 = pcc_loss(x2, t2)
    jax.block_until_ready(loss2)
    ref2 = pcc_loss_ref(x2, t2)
    assert jnp.allclose(loss2, ref2, atol=1e-5, rtol=1e-5), (loss2, ref2)

    # Tiny-tile override: exercises the multi-block, row-masked-tail and
    # core-overflow-skip paths (n_blocks=3 on a 2-core grid) with small data.
    x3 = jax.random.normal(k5, (3, 4, 32, 45), dtype=jnp.float32)
    t3 = 0.6 * x3 + 0.4 * jax.random.normal(k6, (3, 4, 32, 45), dtype=jnp.float32)
    loss3 = pcc_loss(x3, t3, tile_bytes=CHUNK * BN * 4, num_cores=2)
    jax.block_until_ready(loss3)
    ref3 = pcc_loss_ref(x3, t3)
    assert jnp.allclose(loss3, ref3, atol=1e-5, rtol=1e-5), (loss3, ref3)

    print("KERNEL_OK")
</pallas_src>

<mosaic_0001>
module attributes {stable_mosaic.version = 11 : i64} {
  func.func @_pcc_moments_kernel(%arg0: i32, %arg1: i32, %arg2: memref<64x128xf32, #tpu.memory_space<vmem>>, %arg3: memref<64x128xf32, #tpu.memory_space<vmem>>, %arg4: memref<1x5x8x128xf32, #tpu.memory_space<vmem>>) attributes {dimension_semantics = [#tpu.dimension_semantics<parallel>, #tpu.dimension_semantics<arbitrary>], iteration_bounds = array<i64: 1, 1>, scalar_prefetch = 0 : i64, scratch_operands = 0 : i64, tpu.core_type = #tpu.core_type<tc>, window_params = [{transform_indices = @transform_0, window_bounds = array<i64: 64, 128>}, {transform_indices = @transform_1, window_bounds = array<i64: 64, 128>}, {transform_indices = @transform_2, window_bounds = array<i64: 1, 5, 8, 128>}]} {
    %c1_i32 = arith.constant 1 : i32
    %0 = arith.muli %arg0, %c1_i32 : i32
    %1 = arith.addi %0, %arg1 : i32
    %c0_i32 = arith.constant 0 : i32
    %2 = arith.cmpi eq, %arg1, %c0_i32 : i32
    %3 = arith.extui %2 : i1 to i32
    %c0_i32_0 = arith.constant 0 : i32
    %4 = arith.cmpi ne, %3, %c0_i32_0 : i32
    scf.if %4 {
      %cst = arith.constant 0.000000e+00 : f32
      %11 = vector.broadcast %cst : f32 to vector<1x5x8x128xf32>
      %c0 = arith.constant 0 : index
      %c0_5 = arith.constant 0 : index
      %c0_6 = arith.constant 0 : index
      %c0_7 = arith.constant 0 : index
      %12 = vector.load %arg4[%c0, %c0_5, %c0_6, %c0_7] : memref<1x5x8x128xf32, #tpu.memory_space<vmem>>, vector<1x5x8x128xf32>
      tpu.vector_store %arg4[%c0, %c0_5, %c0_6, %c0_7], %11 {strides = array<i32>} : memref<1x5x8x128xf32, #tpu.memory_space<vmem>>, vector<1x5x8x128xf32>,
    } else {
    }
    %c0_i32_1 = arith.constant 0 : i32
    %5 = arith.cmpi slt, %1, %c0_i32_1 : i32
    %6 = arith.extui %5 : i1 to i32
    %c0_i32_2 = arith.constant 0 : i32
    %7 = arith.cmpi ne, %6, %c0_i32_2 : i32
    scf.if %7 {
      %cst = arith.constant 0.000000e+00 : f32
      %11 = vector.broadcast %cst : f32 to vector<8x128xf32>
      %cst_5 = arith.constant 0.000000e+00 : f32
      %12 = vector.broadcast %cst_5 : f32 to vector<8x128xf32>
      %cst_6 = arith.constant 0.000000e+00 : f32
      %13 = vector.broadcast %cst_6 : f32 to vector<8x128xf32>
      %cst_7 = arith.constant 0.000000e+00 : f32
      %14 = vector.broadcast %cst_7 : f32 to vector<8x128xf32>
      %cst_8 = arith.constant 0.000000e+00 : f32
      %15 = vector.broadcast %cst_8 : f32 to vector<8x128xf32>
      %c0_i32_9 = arith.constant 0 : i32
      %c64_i32 = arith.constant 64 : i32
      %16 = arith.muli %c0_i32_9, %c64_i32 : i32
      %17 = tpu.assume_multiple %16, 64 : i32
      %18 = arith.index_cast %17 : i32 to index
      %c0 = arith.constant 0 : index
      %19 = vector.load %arg2[%18, %c0] : memref<64x128xf32, #tpu.memory_space<vmem>>, vector<64x128xf32>
      %20 = arith.index_cast %17 : i32 to index
      %c0_10 = arith.constant 0 : index
      %21 = vector.load %arg3[%20, %c0_10] : memref<64x128xf32, #tpu.memory_space<vmem>>, vector<64x128xf32>
      %22 = vector.shape_cast %19 : vector<64x128xf32> to vector<8x8x128xf32>
      %23 = vector.shape_cast %21 : vector<64x128xf32> to vector<8x8x128xf32>
      %cst_11 = arith.constant dense<0.000000e+00> : vector<8x128xf32>
      %24 = vector.multi_reduction <add>, %22, %cst_11 [0] : vector<8x8x128xf32> to vector<8x128xf32>
      %25 = arith.addf %11, %24 : vector<8x128xf32>
      %cst_12 = arith.constant dense<0.000000e+00> : vector<8x128xf32>
      %26 = vector.multi_reduction <add>, %23, %cst_12 [0] : vector<8x8x128xf32> to vector<8x128xf32>
      %27 = arith.addf %12, %26 : vector<8x128xf32>
      %28 = arith.mulf %22, %23 : vector<8x8x128xf32>
      %cst_13 = arith.constant dense<0.000000e+00> : vector<8x128xf32>
      %29 = vector.multi_reduction <add>, %28, %cst_13 [0] : vector<8x8x128xf32> to vector<8x128xf32>
      %30 = arith.addf %13, %29 : vector<8x128xf32>
      %31 = arith.mulf %22, %22 : vector<8x8x128xf32>
      %cst_14 = arith.constant dense<0.000000e+00> : vector<8x128xf32>
      %32 = vector.multi_reduction <add>, %31, %cst_14 [0] : vector<8x8x128xf32> to vector<8x128xf32>
      %33 = arith.addf %14, %32 : vector<8x128xf32>
      %34 = arith.mulf %23, %23 : vector<8x8x128xf32>
      %cst_15 = arith.constant dense<0.000000e+00> : vector<8x128xf32>
      %35 = vector.multi_reduction <add>, %34, %cst_15 [0] : vector<8x8x128xf32> to vector<8x128xf32>
      %36 = arith.addf %15, %35 : vector<8x128xf32>
      %c1_i32_16 = arith.constant 1 : i32
      %c0_17 = arith.constant 0 : index
      %c0_18 = arith.constant 0 : index
      %c0_19 = arith.constant 0 : index
      %c0_20 = arith.constant 0 : index
      %37 = vector.load %arg4[%c0_17, %c0_18, %c0_19, %c0_20] : memref<1x5x8x128xf32, #tpu.memory_space<vmem>>, vector<1x1x8x128xf32>
      %38 = vector.shape_cast %37 : vector<1x1x8x128xf32> to vector<8x128xf32>
      %39 = arith.addf %38, %25 : vector<8x128xf32>
      %c0_21 = arith.constant 0 : index
      %c0_22 = arith.constant 0 : index
      %c0_23 = arith.constant 0 : index
      %c0_24 = arith.constant 0 : index
      %40 = vector.load %arg4[%c0_21, %c0_22, %c0_23, %c0_24] : memref<1x5x8x128xf32, #tpu.memory_space<vmem>>, vector<1x1x8x128xf32>
      %41 = vector.shape_cast %40 : vector<1x1x8x128xf32> to vector<8x128xf32>
      %42 = vector.shape_cast %39 : vector<8x128xf32> to vector<1x1x8x128xf32>
      tpu.vector_store %arg4[%c0_21, %c0_22, %c0_23, %c0_24], %42 {strides = array<i32>} : memref<1x5x8x128xf32, #tpu.memory_space<vmem>>, vector<1x1x8x128xf32>,
      %c0_25 = arith.constant 0 : index
      %c1 = arith.constant 1 : index
      %c0_26 = arith.constant 0 : index
      %c0_27 = arith.constant 0 : index
      %43 = vector.load %arg4[%c0_25, %c1, %c0_26, %c0_27] : memref<1x5x8x128xf32, #tpu.memory_space<vmem>>, vector<1x1x8x128xf32>
      %44 = vector.shape_cast %43 : vector<1x1x8x128xf32> to vector<8x128xf32>
      %45 = arith.addf %44, %27 : vector<8x128xf32>
      %c0_28 = arith.constant 0 : index
      %c1_29 = arith.constant 1 : index
      %c0_30 = arith.constant 0 : index
      %c0_31 = arith.constant 0 : index
      %46 = vector.load %arg4[%c0_28, %c1_29, %c0_30, %c0_31] : memref<1x5x8x128xf32, #tpu.memory_space<vmem>>, vector<1x1x8x128xf32>
      %47 = vector.shape_cast %46 : vector<1x1x8x128xf32> to vector<8x128xf32>
      %48 = vector.shape_cast %45 : vector<8x128xf32> to vector<1x1x8x128xf32>
      tpu.vector_store %arg4[%c0_28, %c1_29, %c0_30, %c0_31], %48 {strides = array<i32>} : memref<1x5x8x128xf32, #tpu.memory_space<vmem>>, vector<1x1x8x128xf32>,
      %c0_32 = arith.constant 0 : index
      %c2 = arith.constant 2 : index
      %c0_33 = arith.constant 0 : index
      %c0_34 = arith.constant 0 : index
      %49 = vector.load %arg4[%c0_32, %c2, %c0_33, %c0_34] : memref<1x5x8x128xf32, #tpu.memory_space<vmem>>, vector<1x1x8x128xf32>
      %50 = vector.shape_cast %49 : vector<1x1x8x128xf32> to vector<8x128xf32>
      %51 = arith.addf %50, %30 : vector<8x128xf32>
      %c0_35 = arith.constant 0 : index
      %c2_36 = arith.constant 2 : index
      %c0_37 = arith.constant 0 : index
      %c0_38 = arith.constant 0 : index
      %52 = vector.load %arg4[%c0_35, %c2_36, %c0_37, %c0_38] : memref<1x5x8x128xf32, #tpu.memory_space<vmem>>, vector<1x1x8x128xf32>
      %53 = vector.shape_cast %52 : vector<1x1x8x128xf32> to vector<8x128xf32>
      %54 = vector.shape_cast %51 : vector<8x128xf32> to vector<1x1x8x128xf32>
      tpu.vector_store %arg4[%c0_35, %c2_36, %c0_37, %c0_38], %54 {strides = array<i32>} : memref<1x5x8x128xf32, #tpu.memory_space<vmem>>, vector<1x1x8x128xf32>,
      %c0_39 = arith.constant 0 : index
      %c3 = arith.constant 3 : index
      %c0_40 = arith.constant 0 : index
      %c0_41 = arith.constant 0 : index
      %55 = vector.load %arg4[%c0_39, %c3, %c0_40, %c0_41] : memref<1x5x8x128xf32, #tpu.memory_space<vmem>>, vector<1x1x8x128xf32>
      %56 = vector.shape_cast %55 : vector<1x1x8x128xf32> to vector<8x128xf32>
      %57 = arith.addf %56, %33 : vector<8x128xf32>
      %c0_42 = arith.constant 0 : index
      %c3_43 = arith.constant 3 : index
      %c0_44 = arith.constant 0 : index
      %c0_45 = arith.constant 0 : index
      %58 = vector.load %arg4[%c0_42, %c3_43, %c0_44, %c0_45] : memref<1x5x8x128xf32, #tpu.memory_space<vmem>>, vector<1x1x8x128xf32>
      %59 = vector.shape_cast %58 : vector<1x1x8x128xf32> to vector<8x128xf32>
      %60 = vector.shape_cast %57 : vector<8x128xf32> to vector<1x1x8x128xf32>
      tpu.vector_store %arg4[%c0_42, %c3_43, %c0_44, %c0_45], %60 {strides = array<i32>} : memref<1x5x8x128xf32, #tpu.memory_space<vmem>>, vector<1x1x8x128xf32>,
      %c0_46 = arith.constant 0 : index
      %c4 = arith.constant 4 : index
      %c0_47 = arith.constant 0 : index
      %c0_48 = arith.constant 0 : index
      %61 = vector.load %arg4[%c0_46, %c4, %c0_47, %c0_48] : memref<1x5x8x128xf32, #tpu.memory_space<vmem>>, vector<1x1x8x128xf32>
      %62 = vector.shape_cast %61 : vector<1x1x8x128xf32> to vector<8x128xf32>
      %63 = arith.addf %62, %36 : vector<8x128xf32>
      %c0_49 = arith.constant 0 : index
      %c4_50 = arith.constant 4 : index
      %c0_51 = arith.constant 0 : index
      %c0_52 = arith.constant 0 : index
      %64 = vector.load %arg4[%c0_49, %c4_50, %c0_51, %c0_52] : memref<1x5x8x128xf32, #tpu.memory_space<vmem>>, vector<1x1x8x128xf32>
      %65 = vector.shape_cast %64 : vector<1x1x8x128xf32> to vector<8x128xf32>
      %66 = vector.shape_cast %63 : vector<8x128xf32> to vector<1x1x8x128xf32>
      tpu.vector_store %arg4[%c0_49, %c4_50, %c0_51, %c0_52], %66 {strides = array<i32>} : memref<1x5x8x128xf32, #tpu.memory_space<vmem>>, vector<1x1x8x128xf32>,
    } else {
    }
    %c0_i32_3 = arith.constant 0 : i32
    %8 = arith.cmpi eq, %1, %c0_i32_3 : i32
    %9 = arith.extui %8 : i1 to i32
    %c0_i32_4 = arith.constant 0 : i32
    %10 = arith.cmpi ne, %9, %c0_i32_4 : i32
    scf.if %10 {
      %cst = arith.constant 0.000000e+00 : f32
      %11 = vector.broadcast %cst : f32 to vector<8x128xf32>
      %cst_5 = arith.constant 0.000000e+00 : f32
      %12 = vector.broadcast %cst_5 : f32 to vector<8x128xf32>
      %cst_6 = arith.constant 0.000000e+00 : f32
      %13 = vector.broadcast %cst_6 : f32 to vector<8x128xf32>
      %cst_7 = arith.constant 0.000000e+00 : f32
      %14 = vector.broadcast %cst_7 : f32 to vector<8x128xf32>
      %cst_8 = arith.constant 0.000000e+00 : f32
      %15 = vector.broadcast %cst_8 : f32 to vector<8x128xf32>
      %c0_i32_9 = arith.constant 0 : i32
      %c64_i32 = arith.constant 64 : i32
      %16 = arith.muli %c0_i32_9, %c64_i32 : i32
      %17 = tpu.assume_multiple %16, 64 : i32
      %18 = arith.index_cast %17 : i32 to index
      %c0 = arith.constant 0 : index
      %19 = vector.load %arg2[%18, %c0] : memref<64x128xf32, #tpu.memory_space<vmem>>, vector<64x128xf32>
      %20 = arith.index_cast %17 : i32 to index
      %c0_10 = arith.constant 0 : index
      %21 = vector.load %arg3[%20, %c0_10] : memref<64x128xf32, #tpu.memory_space<vmem>>, vector<64x128xf32>
      %c0_i32_11 = arith.constant 0 : i32
      %22 = arith.addi %c0_i32_11, %17 : i32
      %23 = tpu.iota {dimensions = array<i32: 0>} : vector<64x1xi32>
      %24 = vector.broadcast %22 : i32 to vector<64x1xi32>
      %25 = arith.addi %24, %23 : vector<64x1xi32>
      %c16_i32 = arith.constant 16 : i32
      %26 = vector.broadcast %c16_i32 : i32 to vector<64x1xi32>
      %27 = arith.cmpi slt, %25, %26 : vector<64x1xi32>
      %cst_12 = arith.constant 0.000000e+00 : f32
      %28 = vector.shape_cast %27 : vector<64x1xi1> to vector<64x1xi1>
      %29 = vector.broadcast %28 : vector<64x1xi1> to vector<64x128xi1>
      %30 = vector.broadcast %cst_12 : f32 to vector<64x128xf32>
      %31 = arith.select %29, %19, %30 : vector<64x128xi1>, vector<64x128xf32>
      %cst_13 = arith.constant 0.000000e+00 : f32
      %32 = vector.shape_cast %27 : vector<64x1xi1> to vector<64x1xi1>
      %33 = vector.broadcast %32 : vector<64x1xi1> to vector<64x128xi1>
      %34 = vector.broadcast %cst_13 : f32 to vector<64x128xf32>
      %35 = arith.select %33, %21, %34 : vector<64x128xi1>, vector<64x128xf32>
      %36 = vector.shape_cast %31 : vector<64x128xf32> to vector<8x8x128xf32>
      %37 = vector.shape_cast %35 : vector<64x128xf32> to vector<8x8x128xf32>
      %cst_14 = arith.constant dense<0.000000e+00> : vector<8x128xf32>
      %38 = vector.multi_reduction <add>, %36, %cst_14 [0] : vector<8x8x128xf32> to vector<8x128xf32>
      %39 = arith.addf %11, %38 : vector<8x128xf32>
      %cst_15 = arith.constant dense<0.000000e+00> : vector<8x128xf32>
      %40 = vector.multi_reduction <add>, %37, %cst_15 [0] : vector<8x8x128xf32> to vector<8x128xf32>
      %41 = arith.addf %12, %40 : vector<8x128xf32>
      %42 = arith.mulf %36, %37 : vector<8x8x128xf32>
      %cst_16 = arith.constant dense<0.000000e+00> : vector<8x128xf32>
      %43 = vector.multi_reduction <add>, %42, %cst_16 [0] : vector<8x8x128xf32> to vector<8x128xf32>
      %44 = arith.addf %13, %43 : vector<8x128xf32>
      %45 = arith.mulf %36, %36 : vector<8x8x128xf32>
      %cst_17 = arith.constant dense<0.000000e+00> : vector<8x128xf32>
      %46 = vector.multi_reduction <add>, %45, %cst_17 [0] : vector<8x8x128xf32> to vector<8x128xf32>
      %47 = arith.addf %14, %46 : vector<8x128xf32>
      %48 = arith.mulf %37, %37 : vector<8x8x128xf32>
      %cst_18 = arith.constant dense<0.000000e+00> : vector<8x128xf32>
      %49 = vector.multi_reduction <add>, %48, %cst_18 [0] : vector<8x8x128xf32> to vector<8x128xf32>
      %50 = arith.addf %15, %49 : vector<8x128xf32>
      %c1_i32_19 = arith.constant 1 : i32
      %c0_20 = arith.constant 0 : index
      %c0_21 = arith.constant 0 : index
      %c0_22 = arith.constant 0 : index
      %c0_23 = arith.constant 0 : index
      %51 = vector.load %arg4[%c0_20, %c0_21, %c0_22, %c0_23] : memref<1x5x8x128xf32, #tpu.memory_space<vmem>>, vector<1x1x8x128xf32>
      %52 = vector.shape_cast %51 : vector<1x1x8x128xf32> to vector<8x128xf32>
      %53 = arith.addf %52, %39 : vector<8x128xf32>
      %c0_24 = arith.constant 0 : index
      %c0_25 = arith.constant 0 : index
      %c0_26 = arith.constant 0 : index
      %c0_27 = arith.constant 0 : index
      %54 = vector.load %arg4[%c0_24, %c0_25, %c0_26, %c0_27] : memref<1x5x8x128xf32, #tpu.memory_space<vmem>>, vector<1x1x8x128xf32>
      %55 = vector.shape_cast %54 : vector<1x1x8x128xf32> to vector<8x128xf32>
      %56 = vector.shape_cast %53 : vector<8x128xf32> to vector<1x1x8x128xf32>
      tpu.vector_store %arg4[%c0_24, %c0_25, %c0_26, %c0_27], %56 {strides = array<i32>} : memref<1x5x8x128xf32, #tpu.memory_space<vmem>>, vector<1x1x8x128xf32>,
      %c0_28 = arith.constant 0 : index
      %c1 = arith.constant 1 : index
      %c0_29 = arith.constant 0 : index
      %c0_30 = arith.constant 0 : index
      %57 = vector.load %arg4[%c0_28, %c1, %c0_29, %c0_30] : memref<1x5x8x128xf32, #tpu.memory_space<vmem>>, vector<1x1x8x128xf32>
      %58 = vector.shape_cast %57 : vector<1x1x8x128xf32> to vector<8x128xf32>
      %59 = arith.addf %58, %41 : vector<8x128xf32>
      %c0_31 = arith.constant 0 : index
      %c1_32 = arith.constant 1 : index
      %c0_33 = arith.constant 0 : index
      %c0_34 = arith.constant 0 : index
      %60 = vector.load %arg4[%c0_31, %c1_32, %c0_33, %c0_34] : memref<1x5x8x128xf32, #tpu.memory_space<vmem>>, vector<1x1x8x128xf32>
      %61 = vector.shape_cast %60 : vector<1x1x8x128xf32> to vector<8x128xf32>
      %62 = vector.shape_cast %59 : vector<8x128xf32> to vector<1x1x8x128xf32>
      tpu.vector_store %arg4[%c0_31, %c1_32, %c0_33, %c0_34], %62 {strides = array<i32>} : memref<1x5x8x128xf32, #tpu.memory_space<vmem>>, vector<1x1x8x128xf32>,
      %c0_35 = arith.constant 0 : index
      %c2 = arith.constant 2 : index
      %c0_36 = arith.constant 0 : index
      %c0_37 = arith.constant 0 : index
      %63 = vector.load %arg4[%c0_35, %c2, %c0_36, %c0_37] : memref<1x5x8x128xf32, #tpu.memory_space<vmem>>, vector<1x1x8x128xf32>
      %64 = vector.shape_cast %63 : vector<1x1x8x128xf32> to vector<8x128xf32>
      %65 = arith.addf %64, %44 : vector<8x128xf32>
      %c0_38 = arith.constant 0 : index
      %c2_39 = arith.constant 2 : index
      %c0_40 = arith.constant 0 : index
      %c0_41 = arith.constant 0 : index
      %66 = vector.load %arg4[%c0_38, %c2_39, %c0_40, %c0_41] : memref<1x5x8x128xf32, #tpu.memory_space<vmem>>, vector<1x1x8x128xf32>
      %67 = vector.shape_cast %66 : vector<1x1x8x128xf32> to vector<8x128xf32>
      %68 = vector.shape_cast %65 : vector<8x128xf32> to vector<1x1x8x128xf32>
      tpu.vector_store %arg4[%c0_38, %c2_39, %c0_40, %c0_41], %68 {strides = array<i32>} : memref<1x5x8x128xf32, #tpu.memory_space<vmem>>, vector<1x1x8x128xf32>,
      %c0_42 = arith.constant 0 : index
      %c3 = arith.constant 3 : index
      %c0_43 = arith.constant 0 : index
      %c0_44 = arith.constant 0 : index
      %69 = vector.load %arg4[%c0_42, %c3, %c0_43, %c0_44] : memref<1x5x8x128xf32, #tpu.memory_space<vmem>>, vector<1x1x8x128xf32>
      %70 = vector.shape_cast %69 : vector<1x1x8x128xf32> to vector<8x128xf32>
      %71 = arith.addf %70, %47 : vector<8x128xf32>
      %c0_45 = arith.constant 0 : index
      %c3_46 = arith.constant 3 : index
      %c0_47 = arith.constant 0 : index
      %c0_48 = arith.constant 0 : index
      %72 = vector.load %arg4[%c0_45, %c3_46, %c0_47, %c0_48] : memref<1x5x8x128xf32, #tpu.memory_space<vmem>>, vector<1x1x8x128xf32>
      %73 = vector.shape_cast %72 : vector<1x1x8x128xf32> to vector<8x128xf32>
      %74 = vector.shape_cast %71 : vector<8x128xf32> to vector<1x1x8x128xf32>
      tpu.vector_store %arg4[%c0_45, %c3_46, %c0_47, %c0_48], %74 {strides = array<i32>} : memref<1x5x8x128xf32, #tpu.memory_space<vmem>>, vector<1x1x8x128xf32>,
      %c0_49 = arith.constant 0 : index
      %c4 = arith.constant 4 : index
      %c0_50 = arith.constant 0 : index
      %c0_51 = arith.constant 0 : index
      %75 = vector.load %arg4[%c0_49, %c4, %c0_50, %c0_51] : memref<1x5x8x128xf32, #tpu.memory_space<vmem>>, vector<1x1x8x128xf32>
      %76 = vector.shape_cast %75 : vector<1x1x8x128xf32> to vector<8x128xf32>
      %77 = arith.addf %76, %50 : vector<8x128xf32>
      %c0_52 = arith.constant 0 : index
      %c4_53 = arith.constant 4 : index
      %c0_54 = arith.constant 0 : index
      %c0_55 = arith.constant 0 : index
      %78 = vector.load %arg4[%c0_52, %c4_53, %c0_54, %c0_55] : memref<1x5x8x128xf32, #tpu.memory_space<vmem>>, vector<1x1x8x128xf32>
      %79 = vector.shape_cast %78 : vector<1x1x8x128xf32> to vector<8x128xf32>
      %80 = vector.shape_cast %77 : vector<8x128xf32> to vector<1x1x8x128xf32>
      tpu.vector_store %arg4[%c0_52, %c4_53, %c0_54, %c0_55], %80 {strides = array<i32>} : memref<1x5x8x128xf32, #tpu.memory_space<vmem>>, vector<1x1x8x128xf32>,
    } else {
    }
    return
  }
  func.func @transform_0(%arg0: i32, %arg1: i32) -> (i32, i32) {
    %c1_i32 = arith.constant 1 : i32
    %0 = arith.muli %arg0, %c1_i32 : i32
    %1 = arith.addi %0, %arg1 : i32
    %c0_i32 = arith.constant 0 : i32
    %2 = arith.minsi %1, %c0_i32 : i32
    %c0_i32_0 = arith.constant 0 : i32
    %c0_i32_1 = arith.constant 0 : i32
    return %2, %c0_i32_0 : i32, i32
  }
  func.func @transform_1(%arg0: i32, %arg1: i32) -> (i32, i32) {
    %c1_i32 = arith.constant 1 : i32
    %0 = arith.muli %arg0, %c1_i32 : i32
    %1 = arith.addi %0, %arg1 : i32
    %c0_i32 = arith.constant 0 : i32
    %2 = arith.minsi %1, %c0_i32 : i32
    %c0_i32_0 = arith.constant 0 : i32
    %c0_i32_1 = arith.constant 0 : i32
    return %2, %c0_i32_0 : i32, i32
  }
  func.func @transform_2(%arg0: i32, %arg1: i32) -> (i32, i32, i32, i32) {
    %c0_i32 = arith.constant 0 : i32
    %c0_i32_0 = arith.constant 0 : i32
    %c0_i32_1 = arith.constant 0 : i32
    %c0_i32_2 = arith.constant 0 : i32
    return %arg0, %c0_i32, %c0_i32_0, %c0_i32_1 : i32, i32, i32, i32
  }
}

</mosaic_0001>

<bundles_post_ra>
// kernel: pcc_loss.1
= control target key start
LH: loop header
LB: loop body
LE: loop exit
PB: predicated region body
PF: predicated region fallthrough
CT: control target
= control target key end

     0   :  { %s444_s0 = inlined_call_operand.vmem [shape: f32[16,128], index: 0, kind: input, shape index: {}]   ;;  %s445_s1 = inlined_call_operand.vmem [shape: f32[16,128], index: 1, kind: input, shape index: {}]   ;;  %s446_s2 = inlined_call_operand.vmem [shape: f32[1,5,8,128], index: 2, kind: output, shape index: {}]  }
   0x1   :  { %v212_v0 = vld [vmem:[%s444_s0] sm:$0xff]  ;;  %v213_v1 = vld [vmem:[%s444_s0 + $0x8] sm:$0xff] }
   0x2   :  { %v220_v2 = vld [vmem:[%s445_s1] sm:$0xff]  ;;  %v286_v3 = vadd.f32 %v213_v1, %v212_v0  ;;  %v221_v4 = vld [vmem:[%s445_s1 + $0x8] sm:$0xff]  ;;  %v318_v6 = vmul.f32 %v212_v0, %v212_v0  ;;  %v319_v7 = vmul.f32 %v213_v1, %v213_v1 }
   0x3   :  { %v302_v5 = vmul.f32 %v220_v2, %v212_v0  ;;  %v294_v8 = vadd.f32 %v221_v4, %v220_v2  ;;  %v303_v9 = vmul.f32 %v221_v4, %v213_v1  ;;  %v334_v10 = vmul.f32 %v220_v2, %v220_v2 }
   0x4   :  { %v335_v11 = vmul.f32 %v221_v4, %v221_v4  ;;  %v326_v12 = vadd.f32 %v319_v7, %v318_v6  ;;  %352 = vst [vmem:[%s446_s2] sm:$0xff] %v286_v3 }
   0x5   :  { %v310_v13 = vadd.f32 %v303_v9, %v302_v5  ;;  %394 = vst [vmem:[%s446_s2 + $0x8] sm:$0xff] %v294_v8 }
   0x6   :  { %v342_v14 = vadd.f32 %v335_v11, %v334_v10  ;;  %398 = vst [vmem:[%s446_s2 + $0x18] sm:$0xff] %v326_v12 }
   0x7   :  { %396 = vst [vmem:[%s446_s2 + $0x10] sm:$0xff] %v310_v13 }
   0x8   :  { %400 = vst [vmem:[%s446_s2 + $0x20] sm:$0xff] %v342_v14 }

</bundles_post_ra>
